<compile_context>
chip_gen: v5e
topology: v5e:2x2
jax: 0.10.0
libtpu: 0.0.40
codegen_flags: <defaults>
</compile_context>

<pallas_src>
import functools
from math import exp

import jax
import jax.numpy as jnp
from jax.experimental import pallas as pl
from jax.experimental.pallas import tpu as pltpu

WINDOW_SIZE = 11
SIGMA = 1.5
C1 = (0.01 * 255.0) ** 2
C2 = (0.03 * 255.0) ** 2

KRON_MAX_HW = 512  # use the Kronecker single-matmul path when H*W <= this


def gaussian_1d(window_size: int, sigma: float) -> jnp.ndarray:
    g = jnp.array(
        [exp(-((x - window_size // 2) ** 2) / float(2 * sigma ** 2))
         for x in range(window_size)],
        dtype=jnp.float32,
    )
    return g / jnp.sum(g)


def conv_matrix(n: int, window: jnp.ndarray) -> jnp.ndarray:
    """Banded matrix A such that A @ x == same-padded 1-D conv of x with window."""
    ws = window.shape[0]
    pad = ws // 2
    i = jnp.arange(n)[:, None]
    j = jnp.arange(n)[None, :]
    k = j - i + pad
    valid = (k >= 0) & (k < ws)
    kc = jnp.clip(k, 0, ws - 1)
    return jnp.where(valid, window[kc], 0.0).astype(jnp.float32)


def _ssim_from_moments(mu1, mu2, e11, e22, e12):
    mu1_sq = mu1 * mu1
    mu2_sq = mu2 * mu2
    mu1_mu2 = mu1 * mu2
    sigma1_sq = e11 - mu1_sq
    sigma2_sq = e22 - mu2_sq
    sigma12 = e12 - mu1_mu2
    return ((2.0 * mu1_mu2 + C1) * (2.0 * sigma12 + C2)) / (
        (mu1_sq + mu2_sq + C1) * (sigma1_sq + sigma2_sq + C2))


def _ssim_kron_kernel(img1_ref, img2_ref, a2dt_ref, out_ref,
                      *, n_total: int, needs_mask: bool):
    """Small-image path: images arrive flattened to (TN, H*W); one MXU matmul."""
    tn, hw = img1_ref.shape

    # rescale from [-1, 1] to [0, 255]; upcast to f32 inside the kernel
    x1 = 127.5 * (img1_ref[...].astype(jnp.float32) + 1.0)   # (tn, hw), lane-dense
    x2 = 127.5 * (img2_ref[...].astype(jnp.float32) + 1.0)

    # All 5 conv inputs stacked along the sublane axis -> a single large-M matmul.
    # (x1/x2 are copied into the slab once; the three products must be
    # materialized anyway, so the extra traffic is 2*tn*hw stores per step.)
    stacked = jnp.concatenate([x1, x2, x1 * x1, x2 * x2, x1 * x2], axis=0)

    # "Same" Gaussian conv of every map: (5*tn, hw) @ kron(AH, AW)^T.
    u = jnp.dot(stacked, a2dt_ref[...], preferred_element_type=jnp.float32)

    mu1 = u[0 * tn:1 * tn]
    mu2 = u[1 * tn:2 * tn]
    e11 = u[2 * tn:3 * tn]
    e22 = u[3 * tn:4 * tn]
    e12 = u[4 * tn:5 * tn]

    ssim_map = _ssim_from_moments(mu1, mu2, e11, e22, e12)    # (tn, hw)

    if needs_mask:
        # Last grid block may contain garbage rows (no wrapper-side pad).
        # Rows are independent through the matmul, so a select is sufficient.
        prog = pl.program_id(0)
        valid = jnp.minimum(tn, n_total - prog * tn)
        rows = jax.lax.broadcasted_iota(jnp.int32, (tn, hw), 0)
        ssim_map = jnp.where(rows < valid, ssim_map, 0.0)

    out_ref[0] = jnp.full((8, 128), jnp.sum(ssim_map), dtype=jnp.float32)


def _ssim_sep_kernel(img1_ref, img2_ref, awt_ref, ah_ref, out_ref,
                     *, n_total: int, needs_mask: bool):
    """Large-image fallback: separable conv, no per-slice minor-dim transpose."""
    tn, h, w = img1_ref.shape

    x1 = 127.5 * (img1_ref[...].astype(jnp.float32) + 1.0)   # (tn, h, w)
    x2 = 127.5 * (img2_ref[...].astype(jnp.float32) + 1.0)

    stacked = jnp.concatenate([x1, x2, x1 * x1, x2 * x2, x1 * x2], axis=0)

    # H-direction conv via dot_general contracting the sublane axis: (h, 5*tn, w).
    t = jax.lax.dot_general(ah_ref[...], stacked,
                            dimension_numbers=(((1,), (1,)), ((), ())),
                            preferred_element_type=jnp.float32)
    # W-direction conv: one big lane-dim matmul.
    u = jnp.dot(t.reshape(h * 5 * tn, w), awt_ref[...],
                preferred_element_type=jnp.float32).reshape(h, 5 * tn, w)

    mu1 = u[:, 0 * tn:1 * tn, :]
    mu2 = u[:, 1 * tn:2 * tn, :]
    e11 = u[:, 2 * tn:3 * tn, :]
    e22 = u[:, 3 * tn:4 * tn, :]
    e12 = u[:, 4 * tn:5 * tn, :]

    ssim_map = _ssim_from_moments(mu1, mu2, e11, e22, e12)    # (h, tn, w)

    if needs_mask:
        prog = pl.program_id(0)
        valid = jnp.minimum(tn, n_total - prog * tn)
        slices = jax.lax.broadcasted_iota(jnp.int32, (h, tn, w), 1)
        ssim_map = jnp.where(slices < valid, ssim_map, 0.0)

    out_ref[0] = jnp.full((8, 128), jnp.sum(ssim_map), dtype=jnp.float32)


def _vmem_budget():
    """Generation-aware (live-intermediate budget, vmem_limit, want >=2 blocks)."""
    try:
        cap = int(getattr(pltpu.get_tpu_info(), "vmem_capacity_bytes", 64 << 20))
    except Exception:
        cap = 64 << 20
    if cap >= (100 << 20):
        # v5e / v6e: 128 MiB physical VMEM, single TensorCore per chip.
        return 20 << 20, 64 << 20, False
    # v7x (64 MiB per TC, 2 TCs) or unknown: smaller tiles, keep >= 2 blocks.
    return 10 << 20, 40 << 20, True


def _pick_tn(n: int, hw: int, live_budget_bytes: int, want_two_blocks: bool) -> int:
    # ~32 live f32 values per image element in flight per block.
    budget_elems = max(1, live_budget_bytes // (32 * 4))
    tn = max(1, budget_elems // hw)
    tn = min(n, tn)
    if want_two_blocks and n >= 16:
        tn = min(tn, -(-n // 2))          # keep >= 2 grid blocks for 2 TCs
    if tn < n:
        tn = max(8, (tn // 8) * 8)        # sublane-aligned partial blocks
        tn = min(tn, n)
    return int(tn)


def ssim_pallas(img1: jnp.ndarray, img2: jnp.ndarray) -> jnp.ndarray:
    """SSIM(img1, img2) with size_average=True -> scalar f32."""
    B, C, H, W = img1.shape
    N = B * C
    HW = H * W
    use_kron = HW <= KRON_MAX_HW

    live_budget, vmem_limit, want_two_blocks = _vmem_budget()
    TN = _pick_tn(N, HW, live_budget, want_two_blocks)
    num_blocks = -(-N // TN)
    needs_mask = (num_blocks * TN != N)   # no wrapper-side pad: mask in-kernel

    w1d = gaussian_1d(WINDOW_SIZE, SIGMA)

    if use_kron:
        ah = conv_matrix(H, w1d)
        aw = conv_matrix(W, w1d)
        a2dt = jnp.kron(ah, aw).T                       # (HW, HW); right-mult = 2-D conv
        x1 = img1.reshape(N, HW)                        # lane-dense kernel layout
        x2 = img2.reshape(N, HW)
        kernel = functools.partial(_ssim_kron_kernel,
                                   n_total=N, needs_mask=needs_mask)
        in_specs = [
            pl.BlockSpec((TN, HW), lambda n: (n, 0)),
            pl.BlockSpec((TN, HW), lambda n: (n, 0)),
            pl.BlockSpec((HW, HW), lambda n: (0, 0)),
        ]
        operands = (x1, x2, a2dt)
    else:
        awt = conv_matrix(W, w1d).T                     # right-mult = conv along W
        ah = conv_matrix(H, w1d)                        # left-contract = conv along H
        x1 = img1.reshape(N, H, W)
        x2 = img2.reshape(N, H, W)
        kernel = functools.partial(_ssim_sep_kernel,
                                   n_total=N, needs_mask=needs_mask)
        in_specs = [
            pl.BlockSpec((TN, H, W), lambda n: (n, 0, 0)),
            pl.BlockSpec((TN, H, W), lambda n: (n, 0, 0)),
            pl.BlockSpec((W, W), lambda n: (0, 0)),
            pl.BlockSpec((H, H), lambda n: (0, 0)),
        ]
        operands = (x1, x2, awt, ah)

    partial_sums = pl.pallas_call(
        kernel,
        out_shape=jax.ShapeDtypeStruct((num_blocks, 8, 128), jnp.float32),
        grid_spec=pltpu.PrefetchScalarGridSpec(
            num_scalar_prefetch=0,
            grid=(num_blocks,),
            in_specs=in_specs,
            out_specs=pl.BlockSpec((1, 8, 128), lambda n: (n, 0, 0)),
        ),
        compiler_params=pltpu.CompilerParams(
            dimension_semantics=("parallel",),          # lets v7x split the grid
            vmem_limit_bytes=int(vmem_limit),
        ),
    )(*operands)

    # Final reduction (one scalar per grid step) done in XLA.
    return jnp.sum(partial_sums[:, 0, 0]) / float(N * H * W)


def ssim_reference(img1, img2):
    """Pure-JAX reference using the separable-conv-as-matmul identity."""
    B, C, H, W = img1.shape
    x1 = 255.0 * 0.5 * (img1.reshape(B * C, H, W).astype(jnp.float32) + 1.0)
    x2 = 255.0 * 0.5 * (img2.reshape(B * C, H, W).astype(jnp.float32) + 1.0)
    w1d = gaussian_1d(WINDOW_SIZE, SIGMA)
    ah = conv_matrix(H, w1d)
    awt = conv_matrix(W, w1d).T

    def gconv(x):
        return jnp.einsum("hi,niw->nhw", ah, x) @ awt

    mu1, mu2 = gconv(x1), gconv(x2)
    mu1_sq, mu2_sq, mu1_mu2 = mu1 * mu1, mu2 * mu2, mu1 * mu2
    s1 = gconv(x1 * x1) - mu1_sq
    s2 = gconv(x2 * x2) - mu2_sq
    s12 = gconv(x1 * x2) - mu1_mu2
    m = ((2 * mu1_mu2 + C1) * (2 * s12 + C2)) / (
        (mu1_sq + mu2_sq + C1) * (s1 + s2 + C2))
    return jnp.mean(m)


if __name__ == "__main__":
    key = jax.random.PRNGKey(0)
    k1, k2 = jax.random.split(key)
    # inputs are assumed to be in roughly [-1, 1] (as the rescale implies)
    img1 = jax.random.uniform(k1, (2, 4, 16, 16), jnp.float32, -1.0, 1.0)
    img2 = jax.random.uniform(k2, (2, 4, 16, 16), jnp.float32, -1.0, 1.0)

    out = ssim_pallas(img1, img2)
    jax.block_until_ready(out)

    ref = ssim_reference(img1, img2)
    assert jnp.allclose(out, ref, rtol=1e-4, atol=1e-5), (out, ref)

    print("KERNEL_OK")
</pallas_src>

<mosaic_0001>
module attributes {stable_mosaic.version = 11 : i64} {
  func.func @_ssim_kron_kernel(%arg0: i32, %arg1: memref<8x256xf32, #tpu.memory_space<vmem>>, %arg2: memref<8x256xf32, #tpu.memory_space<vmem>>, %arg3: memref<256x256xf32, #tpu.memory_space<vmem>>, %arg4: memref<1x8x128xf32, #tpu.memory_space<vmem>>) attributes {dimension_semantics = [#tpu.dimension_semantics<parallel>], iteration_bounds = array<i64: 1>, scalar_prefetch = 0 : i64, scratch_operands = 0 : i64, tpu.core_type = #tpu.core_type<tc>, window_params = [{transform_indices = @transform_0, window_bounds = array<i64: 8, 256>}, {transform_indices = @transform_1, window_bounds = array<i64: 8, 256>}, {pipeline_mode = #tpu.pipeline_mode<synchronous>, transform_indices = @transform_2, window_bounds = array<i64: 256, 256>}, {transform_indices = @transform_3, window_bounds = array<i64: 1, 8, 128>}]} {
    %c0 = arith.constant 0 : index
    %c0_0 = arith.constant 0 : index
    %0 = vector.load %arg1[%c0, %c0_0] : memref<8x256xf32, #tpu.memory_space<vmem>>, vector<8x256xf32>
    %cst = arith.constant 1.000000e+00 : f32
    %1 = vector.broadcast %cst : f32 to vector<8x256xf32>
    %2 = arith.addf %0, %1 : vector<8x256xf32>
    %cst_1 = arith.constant 1.275000e+02 : f32
    %3 = vector.broadcast %cst_1 : f32 to vector<8x256xf32>
    %4 = arith.mulf %3, %2 : vector<8x256xf32>
    %c0_2 = arith.constant 0 : index
    %c0_3 = arith.constant 0 : index
    %5 = vector.load %arg2[%c0_2, %c0_3] : memref<8x256xf32, #tpu.memory_space<vmem>>, vector<8x256xf32>
    %cst_4 = arith.constant 1.000000e+00 : f32
    %6 = vector.broadcast %cst_4 : f32 to vector<8x256xf32>
    %7 = arith.addf %5, %6 : vector<8x256xf32>
    %cst_5 = arith.constant 1.275000e+02 : f32
    %8 = vector.broadcast %cst_5 : f32 to vector<8x256xf32>
    %9 = arith.mulf %8, %7 : vector<8x256xf32>
    %10 = arith.mulf %4, %4 : vector<8x256xf32>
    %11 = arith.mulf %9, %9 : vector<8x256xf32>
    %12 = arith.mulf %4, %9 : vector<8x256xf32>
    %13 = tpu.concatenate %4, %9, %10, %11, %12 in 0 : vector<8x256xf32>, vector<8x256xf32>, vector<8x256xf32>, vector<8x256xf32>, vector<8x256xf32> -> vector<40x256xf32>
    %c0_6 = arith.constant 0 : index
    %c0_7 = arith.constant 0 : index
    %14 = vector.load %arg3[%c0_6, %c0_7] : memref<256x256xf32, #tpu.memory_space<vmem>>, vector<256x256xf32>
    %cst_8 = arith.constant dense<0.000000e+00> : vector<40x256xf32>
    %15 = tpu.matmul %13, %14, %cst_8 {dimension_numbers = #tpu.dot_dimension_numbers<[1], [0], [0], [1], [0, 0, 1, 1], [], []>} : vector<40x256xf32>, vector<256x256xf32>, vector<40x256xf32> -> vector<40x256xf32>
    %16 = vector.extract_strided_slice %15 {offsets = [0, 0], sizes = [8, 256], strides = [1, 1]} : vector<40x256xf32> to vector<8x256xf32>
    %17 = vector.extract_strided_slice %15 {offsets = [8, 0], sizes = [8, 256], strides = [1, 1]} : vector<40x256xf32> to vector<8x256xf32>
    %18 = vector.extract_strided_slice %15 {offsets = [16, 0], sizes = [8, 256], strides = [1, 1]} : vector<40x256xf32> to vector<8x256xf32>
    %19 = vector.extract_strided_slice %15 {offsets = [24, 0], sizes = [8, 256], strides = [1, 1]} : vector<40x256xf32> to vector<8x256xf32>
    %20 = vector.extract_strided_slice %15 {offsets = [32, 0], sizes = [8, 256], strides = [1, 1]} : vector<40x256xf32> to vector<8x256xf32>
    %21 = arith.mulf %16, %16 : vector<8x256xf32>
    %22 = arith.mulf %17, %17 : vector<8x256xf32>
    %23 = arith.mulf %16, %17 : vector<8x256xf32>
    %24 = arith.subf %18, %21 : vector<8x256xf32>
    %25 = arith.subf %19, %22 : vector<8x256xf32>
    %26 = arith.subf %20, %23 : vector<8x256xf32>
    %cst_9 = arith.constant 2.000000e+00 : f32
    %27 = vector.broadcast %cst_9 : f32 to vector<8x256xf32>
    %28 = arith.mulf %27, %23 : vector<8x256xf32>
    %cst_10 = arith.constant 6.502500e+00 : f32
    %29 = vector.broadcast %cst_10 : f32 to vector<8x256xf32>
    %30 = arith.addf %28, %29 : vector<8x256xf32>
    %cst_11 = arith.constant 2.000000e+00 : f32
    %31 = vector.broadcast %cst_11 : f32 to vector<8x256xf32>
    %32 = arith.mulf %31, %26 : vector<8x256xf32>
    %cst_12 = arith.constant 5.852250e+01 : f32
    %33 = vector.broadcast %cst_12 : f32 to vector<8x256xf32>
    %34 = arith.addf %32, %33 : vector<8x256xf32>
    %35 = arith.mulf %30, %34 : vector<8x256xf32>
    %36 = arith.addf %21, %22 : vector<8x256xf32>
    %cst_13 = arith.constant 6.502500e+00 : f32
    %37 = vector.broadcast %cst_13 : f32 to vector<8x256xf32>
    %38 = arith.addf %36, %37 : vector<8x256xf32>
    %39 = arith.addf %24, %25 : vector<8x256xf32>
    %cst_14 = arith.constant 5.852250e+01 : f32
    %40 = vector.broadcast %cst_14 : f32 to vector<8x256xf32>
    %41 = arith.addf %39, %40 : vector<8x256xf32>
    %42 = arith.mulf %38, %41 : vector<8x256xf32>
    %43 = arith.divf %35, %42 : vector<8x256xf32>
    %44 = vector.shape_cast %43 : vector<8x256xf32> to vector<1x8x256xf32>
    %cst_15 = arith.constant dense<0.000000e+00> : vector<1xf32>
    %45 = vector.multi_reduction <add>, %44, %cst_15 [1, 2] : vector<1x8x256xf32> to vector<1xf32>
    %46 = vector.shape_cast %45 : vector<1xf32> to vector<1x1x1xf32>
    %47 = vector.extract %46[0, 0, 0] : f32 from vector<1x1x1xf32>
    %48 = vector.broadcast %47 : f32 to vector<8x128xf32>
    %c0_16 = arith.constant 0 : index
    %c0_17 = arith.constant 0 : index
    %c0_18 = arith.constant 0 : index
    %49 = vector.load %arg4[%c0_16, %c0_17, %c0_18] : memref<1x8x128xf32, #tpu.memory_space<vmem>>, vector<1x8x128xf32>
    %50 = vector.shape_cast %49 : vector<1x8x128xf32> to vector<8x128xf32>
    %51 = vector.shape_cast %48 : vector<8x128xf32> to vector<1x8x128xf32>
    tpu.vector_store %arg4[%c0_16, %c0_17, %c0_18], %51 {strides = array<i32>} : memref<1x8x128xf32, #tpu.memory_space<vmem>>, vector<1x8x128xf32>,
    return
  }
  func.func @transform_0(%arg0: i32) -> (i32, i32) {
    %c0_i32 = arith.constant 0 : i32
    %c0_i32_0 = arith.constant 0 : i32
    return %arg0, %c0_i32 : i32, i32
  }
  func.func @transform_1(%arg0: i32) -> (i32, i32) {
    %c0_i32 = arith.constant 0 : i32
    %c0_i32_0 = arith.constant 0 : i32
    return %arg0, %c0_i32 : i32, i32
  }
  func.func @transform_2(%arg0: i32) -> (i32, i32) {
    %c0_i32 = arith.constant 0 : i32
    %c0_i32_0 = arith.constant 0 : i32
    %c0_i32_1 = arith.constant 0 : i32
    return %c0_i32, %c0_i32_0 : i32, i32
  }
  func.func @transform_3(%arg0: i32) -> (i32, i32, i32) {
    %c0_i32 = arith.constant 0 : i32
    %c0_i32_0 = arith.constant 0 : i32
    %c0_i32_1 = arith.constant 0 : i32
    return %arg0, %c0_i32, %c0_i32_0 : i32, i32, i32
  }
}

</mosaic_0001>

<bundles_post_ra>
// kernel: tpu_custom_call.1
= control target key start
LH: loop header
LB: loop body
LE: loop exit
PB: predicated region body
PF: predicated region fallthrough
CT: control target
= control target key end

     0   :  { %8 = vsyncpa [#allocation3], 0  ;;  %s512_s0 = inlined_call_operand.hbm [shape: f32[8,256], index: 0, kind: input, shape index: {}]   ;;  %s513_s1 = inlined_call_operand.hbm [shape: f32[8,256], index: 1, kind: input, shape index: {}]   ;;  %s514_s2 = inlined_call_operand.hbm [shape: f32[256,256], index: 2, kind: input, shape index: {}]   ;;  %s515_s3 = inlined_call_operand.hbm [shape: f32[1,8,128], index: 3, kind: output, shape index: {}]  }
   0x1   :  { %9 = vsyncpa [#allocation6], 0  ;;  %s27_s14 = sshll.u32 %s513_s1, 4  ;;  %s28_s14 = int_to_ptr.hbm [resolvable:$true] %s27_s14 }
   0x2   :  { %10 = vsyncpa [#allocation4], 0  ;;  %s474_s15 = smov [#allocation5]   ;;  %s16_s19 = sshll.u32 %s512_s0, 4  ;;  %s17_s19 = int_to_ptr.hbm [resolvable:$true] %s16_s19 }
   0x3   :  { %s29_s16 = sshll.u32 %s474_s15, 4  ;;  %s475_s20 = smov [#allocation2]   ;;  %s30_s16 = int_to_ptr.vmem [resolvable:$true] %s29_s16 }
   0x4   :  { %32 = dma.hbm_to_vmem [thread:$0]  %s28_s14, 256, %s30_s16, [#allocation6]  }
   0x5   :  { %s18_s21 = sshll.u32 %s475_s20, 4  ;;  %s37_s24 = sshll.u32 %s514_s2, 4  ;;  %s19_s21 = int_to_ptr.vmem [resolvable:$true] %s18_s21  ;;  %s38_s24 = int_to_ptr.hbm [resolvable:$true] %s37_s24 }
   0x6   :  { %21 = dma.hbm_to_vmem [thread:$0]  %s17_s19, 256, %s19_s21, [#allocation3]  }
   0x7   :  { %s476_s1 = smov [#allocation7]   ;;  %s477_s26 = smov 256  }
   0x8   :  { %s39_s25 = sshll.u32 %s476_s1, 4  ;;  %s478_s27 = smov 16   ;;  %s40_s25 = int_to_ptr.vmem [resolvable:$true] %s39_s25 }
   0x9   :  { %45 = dma.hbm_to_vmem [thread:$0]  %s38_s24, 8192, %s40_s25, [#allocation6], %s477_s26, %s477_s26, %s478_s27  }
   0xa   :  { %468 = dma.done.wait [#allocation3], 256  }
   0xb   :  { %469 = vsyncadd [#allocation3], 4294967040 }
   0xc   :  { %470 = dma.done.wait [#allocation6], 8448  }
   0xd   :  { %471 = vsyncadd [#allocation6], 4294958848  ;;  %v106_v0 = vld [vmem:[#allocation7 + $0xf0] sm:$0xff]  ;;  %v107_v2 = vld [vmem:[#allocation7 + $0xf8] sm:$0xff]  ;;  %s479_s0 = smov [#allocation8]   ;;  %s349_s30 = sshll.u32 %s515_s3, 4  ;;  %s350_s30 = int_to_ptr.hbm [resolvable:$true] %s349_s30 }
   0xe   :  { %v138_v1 = vld [vmem:[#allocation7 + $0x1f0] sm:$0xff]  ;;  %140 = vmatpush.msra.mxu0 %v106_v0  ;;  %v139_v3 = vld [vmem:[#allocation7 + $0x1f8] sm:$0xff]  ;;  %v104_v4 = vld [vmem:[#allocation7 + $0xe0] sm:$0xff]  ;;  %204 = vmatpush.msra.mxu2 %v107_v2  ;;  %s347_s2 = sshll.u32 %s479_s0, 4  ;;  %s348_s2 = int_to_ptr.vmem [resolvable:$true] %s347_s2 }
   0xf   :  { %172 = vmatpush.msra.mxu1 %v138_v1  ;;  %v136_v5 = vld [vmem:[#allocation7 + $0x1e0] sm:$0xff]  ;;  %236 = vmatpush.msra.mxu3 %v139_v3  ;;  %v105_v6 = vld [vmem:[#allocation7 + $0xe8] sm:$0xff]  ;;  %v102_v8 = vld [vmem:[#allocation7 + $0xd0] sm:$0xff] }
  0x10   :  { %v137_v7 = vld [vmem:[#allocation7 + $0x1e8] sm:$0xff]  ;;  %141 = vmatpush.msra.mxu0 %v104_v4  ;;  %v134_v9 = vld [vmem:[#allocation7 + $0x1d0] sm:$0xff]  ;;  %v103_v10 = vld [vmem:[#allocation7 + $0xd8] sm:$0xff]  ;;  %205 = vmatpush.msra.mxu2 %v105_v6 }
  0x11   :  { %173 = vmatpush.msra.mxu1 %v136_v5  ;;  %v135_v11 = vld [vmem:[#allocation7 + $0x1d8] sm:$0xff]  ;;  %237 = vmatpush.msra.mxu3 %v137_v7  ;;  %v100_v12 = vld [vmem:[#allocation7 + $0xc0] sm:$0xff]  ;;  %v101_v14 = vld [vmem:[#allocation7 + $0xc8] sm:$0xff] }
  0x12   :  { %v132_v13 = vld [vmem:[#allocation7 + $0x1c0] sm:$0xff]  ;;  %142 = vmatpush.msra.mxu0 %v102_v8  ;;  %v133_v15 = vld [vmem:[#allocation7 + $0x1c8] sm:$0xff]  ;;  %206 = vmatpush.msra.mxu2 %v103_v10  ;;  %v98_v16 = vld [vmem:[#allocation7 + $0xb0] sm:$0xff] }
  0x13   :  { %174 = vmatpush.msra.mxu1 %v134_v9  ;;  %238 = vmatpush.msra.mxu3 %v135_v11  ;;  %v130_v17 = vld [vmem:[#allocation7 + $0x1b0] sm:$0xff]  ;;  %v99_v18 = vld [vmem:[#allocation7 + $0xb8] sm:$0xff]  ;;  %v96_v20 = vld [vmem:[#allocation7 + $0xa0] sm:$0xff] }
  0x14   :  { %143 = vmatpush.msra.mxu0 %v100_v12  ;;  %v131_v19 = vld [vmem:[#allocation7 + $0x1b8] sm:$0xff]  ;;  %207 = vmatpush.msra.mxu2 %v101_v14  ;;  %v128_v21 = vld [vmem:[#allocation7 + $0x1a0] sm:$0xff]  ;;  %v97_v22 = vld [vmem:[#allocation7 + $0xa8] sm:$0xff] }
  0x15   :  { %175 = vmatpush.msra.mxu1 %v132_v13  ;;  %239 = vmatpush.msra.mxu3 %v133_v15  ;;  %v129_v23 = vld [vmem:[#allocation7 + $0x1a8] sm:$0xff]  ;;  %v94_v24 = vld [vmem:[#allocation7 + $0x90] sm:$0xff]  ;;  %v95_v26 = vld [vmem:[#allocation7 + $0x98] sm:$0xff] }
  0x16   :  { %144 = vmatpush.msra.mxu0 %v98_v16  ;;  %208 = vmatpush.msra.mxu2 %v99_v18  ;;  %v126_v25 = vld [vmem:[#allocation7 + $0x190] sm:$0xff]  ;;  %v127_v27 = vld [vmem:[#allocation7 + $0x198] sm:$0xff]  ;;  %v92_v28 = vld [vmem:[#allocation7 + $0x80] sm:$0xff] }
  0x17   :  { %176 = vmatpush.msra.mxu1 %v130_v17  ;;  %240 = vmatpush.msra.mxu3 %v131_v19  ;;  %v124_v29 = vld [vmem:[#allocation7 + $0x180] sm:$0xff]  ;;  %v93_v30 = vld [vmem:[#allocation7 + $0x88] sm:$0xff]  ;;  %v90_v32 = vld [vmem:[#allocation7 + $0x70] sm:$0xff] }
  0x18   :  { %145 = vmatpush.msra.mxu0 %v96_v20  ;;  %209 = vmatpush.msra.mxu2 %v97_v22  ;;  %v125_v31 = vld [vmem:[#allocation7 + $0x188] sm:$0xff]  ;;  %v122_v33 = vld [vmem:[#allocation7 + $0x170] sm:$0xff]  ;;  %v91_v34 = vld [vmem:[#allocation7 + $0x78] sm:$0xff] }
  0x19   :  { %177 = vmatpush.msra.mxu1 %v128_v21  ;;  %241 = vmatpush.msra.mxu3 %v129_v23  ;;  %v123_v35 = vld [vmem:[#allocation7 + $0x178] sm:$0xff]  ;;  %v88_v36 = vld [vmem:[#allocation7 + $0x60] sm:$0xff]  ;;  %v89_v38 = vld [vmem:[#allocation7 + $0x68] sm:$0xff] }
  0x1a   :  { %146 = vmatpush.msra.mxu0 %v94_v24  ;;  %210 = vmatpush.msra.mxu2 %v95_v26  ;;  %v120_v37 = vld [vmem:[#allocation7 + $0x160] sm:$0xff]  ;;  %v121_v39 = vld [vmem:[#allocation7 + $0x168] sm:$0xff]  ;;  %v86_v40 = vld [vmem:[#allocation7 + $0x50] sm:$0xff] }
  0x1b   :  { %178 = vmatpush.msra.mxu1 %v126_v25  ;;  %242 = vmatpush.msra.mxu3 %v127_v27  ;;  %v118_v41 = vld [vmem:[#allocation7 + $0x150] sm:$0xff]  ;;  %v87_v42 = vld [vmem:[#allocation7 + $0x58] sm:$0xff]  ;;  %v84_v44 = vld [vmem:[#allocation7 + $0x40] sm:$0xff] }
  0x1c   :  { %147 = vmatpush.msra.mxu0 %v92_v28  ;;  %211 = vmatpush.msra.mxu2 %v93_v30  ;;  %v119_v43 = vld [vmem:[#allocation7 + $0x158] sm:$0xff]  ;;  %v116_v45 = vld [vmem:[#allocation7 + $0x140] sm:$0xff]  ;;  %v85_v46 = vld [vmem:[#allocation7 + $0x48] sm:$0xff] }
  0x1d   :  { %179 = vmatpush.msra.mxu1 %v124_v29  ;;  %243 = vmatpush.msra.mxu3 %v125_v31  ;;  %v117_v47 = vld [vmem:[#allocation7 + $0x148] sm:$0xff]  ;;  %v82_v48 = vld [vmem:[#allocation7 + $0x30] sm:$0xff]  ;;  %v58_v50 = vld [vmem:[#allocation2] sm:$0xff] }
  0x1e   :  { %148 = vmatpush.msra.mxu0 %v90_v32  ;;  %212 = vmatpush.msra.mxu2 %v91_v34  ;;  %v114_v49 = vld [vmem:[#allocation7 + $0x130] sm:$0xff]  ;;  %v59_v51 = vld [vmem:[#allocation2 + $0x8] sm:$0xff]  ;;  %v83_v52 = vld [vmem:[#allocation7 + $0x38] sm:$0xff]  ;;  %v60_v58 = vadd.f32 1.0, %v58_v50 }
  0x1f   :  { %180 = vmatpush.msra.mxu1 %v122_v33  ;;  %244 = vmatpush.msra.mxu3 %v123_v35  ;;  %v115_v53 = vld [vmem:[#allocation7 + $0x138] sm:$0xff]  ;;  %v80_v54 = vld [vmem:[#allocation7 + $0x20] sm:$0xff]  ;;  %v81_v56 = vld [vmem:[#allocation7 + $0x28] sm:$0xff]  ;;  %v61_v59 = vadd.f32 1.0, %v59_v51 }
  0x20   :  { %149 = vmatpush.msra.mxu0 %v88_v36  ;;  %213 = vmatpush.msra.mxu2 %v89_v38  ;;  %v112_v55 = vld [vmem:[#allocation7 + $0x120] sm:$0xff]  ;;  %v113_v57 = vld [vmem:[#allocation7 + $0x128] sm:$0xff]  ;;  %v78_v60 = vld [vmem:[#allocation7 + $0x10] sm:$0xff]  ;;  %v62_v4 = vmul.f32 127.5, %v60_v58 }
  0x21   :  { %181 = vmatpush.msra.mxu1 %v120_v37  ;;  %245 = vmatpush.msra.mxu3 %v121_v39  ;;  %v110_v61 = vld [vmem:[#allocation7 + $0x110] sm:$0xff]  ;;  %v79_v62 = vld [vmem:[#allocation7 + $0x18] sm:$0xff]  ;;  %v76_v0 = vld [vmem:[#allocation7] sm:$0xff]  ;;  %v63_v5 = vmul.f32 127.5, %v61_v59 }
  0x22   :  { %150 = vmatpush.msra.mxu0 %v86_v40  ;;  %214 = vmatpush.msra.mxu2 %v87_v42  ;;  %v111_v63 = vld [vmem:[#allocation7 + $0x118] sm:$0xff]  ;;  %v108_v1 = vld [vmem:[#allocation7 + $0x100] sm:$0xff]  ;;  %v77_v2 = vld [vmem:[#allocation7 + $0x8] sm:$0xff]  ;;  %v70_v12 = vmul.f32 %v62_v4, %v62_v4 }
  0x23   :  { %182 = vmatpush.msra.mxu1 %v118_v41  ;;  %246 = vmatpush.msra.mxu3 %v119_v43  ;;  %v109_v3 = vld [vmem:[#allocation7 + $0x108] sm:$0xff]  ;;  %v64_v6 = vld [vmem:[#allocation5] sm:$0xff]  ;;  %v65_v7 = vld [vmem:[#allocation5 + $0x8] sm:$0xff]  ;;  %v71_v13 = vmul.f32 %v63_v5, %v63_v5 }
  0x24   :  { %151 = vmatpush.msra.mxu0 %v84_v44  ;;  %215 = vmatpush.msra.mxu2 %v85_v46  ;;  %v66_v8 = vadd.f32 1.0, %v64_v6  ;;  %v67_v9 = vadd.f32 1.0, %v65_v7 }
  0x25   :  { %183 = vmatpush.msra.mxu1 %v116_v45  ;;  %247 = vmatpush.msra.mxu3 %v117_v47 }
  0x26   :  { %152 = vmatpush.msra.mxu0 %v82_v48  ;;  %216 = vmatpush.msra.mxu2 %v83_v52  ;;  %v68_v10 = vmul.f32 127.5, %v66_v8  ;;  %v69_v11 = vmul.f32 127.5, %v67_v9 }
  0x27   :  { %184 = vmatpush.msra.mxu1 %v114_v49  ;;  %248 = vmatpush.msra.mxu3 %v115_v53 }
  0x28   :  { %153 = vmatpush.msra.mxu0 %v80_v54  ;;  %217 = vmatpush.msra.mxu2 %v81_v56  ;;  %v72_v14 = vmul.f32 %v68_v10, %v68_v10  ;;  %v73_v15 = vmul.f32 %v69_v11, %v69_v11  ;;  %v74_v16 = vmul.f32 %v68_v10, %v62_v4 }
  0x29   :  { %185 = vmatpush.msra.mxu1 %v112_v55  ;;  %249 = vmatpush.msra.mxu3 %v113_v57  ;;  %v75_v17 = vmul.f32 %v69_v11, %v63_v5 }
  0x2a   :  { %154 = vmatpush.msra.mxu0 %v78_v60  ;;  %218 = vmatpush.msra.mxu2 %v79_v62 }
  0x2b   :  { %186 = vmatpush.msra.mxu1 %v110_v61  ;;  %250 = vmatpush.msra.mxu3 %v111_v63 }
  0x2c   :  { %155 = vmatpush.msra.mxu0 %v76_v0  ;;  %219 = vmatpush.msra.mxu2 %v77_v2 }
  0x2d   :  { %187 = vmatpush.msra.mxu1 %v108_v1  ;;  %251 = vmatpush.msra.mxu3 %v109_v3 }
  0x2e   :  { %156 = vmatmul.f32.vlgmr.msra.gmra.mxu0 %v62_v4  ;;  %188 = vmatmul.f32.vlgmr.msra.gmra.mxu1 %v63_v5 }
  0x2f   :  { %220 = vmatmul.f32.vlgmr.msra.gmra.mxu2 %v62_v4  ;;  %252 = vmatmul.f32.vlgmr.msra.gmra.mxu3 %v63_v5 }
  0x36   :  { %159 = vmatmul.f32.gmra.mxu0 %v68_v10  ;;  %191 = vmatmul.f32.gmra.mxu1 %v69_v11 }
  0x37   :  { %223 = vmatmul.f32.gmra.mxu2 %v68_v10  ;;  %255 = vmatmul.f32.gmra.mxu3 %v69_v11 }
  0x3e   :  { %162 = vmatmul.f32.gmra.mxu0 %v70_v12  ;;  %194 = vmatmul.f32.gmra.mxu1 %v71_v13 }
  0x3f   :  { %226 = vmatmul.f32.gmra.mxu2 %v70_v12  ;;  %258 = vmatmul.f32.gmra.mxu3 %v71_v13 }
  0x46   :  { %165 = vmatmul.f32.gmra.mxu0 %v72_v14  ;;  %197 = vmatmul.f32.gmra.mxu1 %v73_v15 }
  0x47   :  { %229 = vmatmul.f32.gmra.mxu2 %v72_v14  ;;  %261 = vmatmul.f32.gmra.mxu3 %v73_v15 }
  0x4e   :  { %168 = vmatmul.f32.gmra.mxu0 %v74_v16  ;;  %200 = vmatmul.f32.gmra.mxu1 %v75_v17 }
  0x4f   :  { %232 = vmatmul.f32.gmra.mxu2 %v74_v16  ;;  %264 = vmatmul.f32.gmra.mxu3 %v75_v17 }
  0xab   :  { %v157_v18 = vpop.f32.mrf.mxu0  ;;  %v189_v19 = vpop.f32.mrf.mxu1 }
  0xac   :  { %v190_v29 = vadd.f32 %v189_v19, %v157_v18 }
  0xae   :  { %v268_v36 = vmul.f32 %v190_v29, %v190_v29 }
  0xb2   :  { %v221_v20 = vpop.f32.mrf.mxu2  ;;  %v253_v21 = vpop.f32.mrf.mxu3 }
  0xb3   :  { %v160_v22 = vpop.f32.mrf.mxu0  ;;  %v192_v23 = vpop.f32.mrf.mxu1  ;;  %v254_v42 = vadd.f32 %v253_v21, %v221_v20 }
  0xb4   :  { %v193_v28 = vadd.f32 %v192_v23, %v160_v22 }
  0xb5   :  { %v269_v50 = vmul.f32 %v254_v42, %v254_v42 }
  0xb6   :  { %v270_v30 = vmul.f32 %v193_v28, %v193_v28  ;;  %v272_v3 = vmul.f32 %v193_v28, %v190_v29 }
  0xb8   :  { %v290_v39 = vadd.f32 %v270_v30, %v268_v36  ;;  %v280_v15 = vmul.f32 2.0, %v272_v3 }
  0xba   :  { %v224_v24 = vpop.f32.mrf.mxu2  ;;  %v256_v25 = vpop.f32.mrf.mxu3  ;;  %v292_v46 = vadd.f32 6.5025, %v290_v39 }
  0xbb   :  { %v163_v26 = vpop.f32.mrf.mxu0  ;;  %v195_v27 = vpop.f32.mrf.mxu1  ;;  %v257_v38 = vadd.f32 %v256_v25, %v224_v24 }
  0xbc   :  { %v196_v31 = vadd.f32 %v195_v27, %v163_v26  ;;  %v282_v26 = vadd.f32 6.5025, %v280_v15 }
  0xbd   :  { %v271_v44 = vmul.f32 %v257_v38, %v257_v38  ;;  %v273_v5 = vmul.f32 %v257_v38, %v254_v42 }
  0xbe   :  { %v274_v40 = vsub.f32 %v196_v31, %v268_v36 }
  0xbf   :  { %v291_v53 = vadd.f32 %v271_v44, %v269_v50  ;;  %v281_v17 = vmul.f32 2.0, %v273_v5 }
  0xc1   :  { %v293_v59 = vadd.f32 6.5025, %v291_v53  ;;  %v283_v28 = vadd.f32 6.5025, %v281_v17 }
  0xc2   :  { %v227_v32 = vpop.f32.mrf.mxu2  ;;  %v259_v33 = vpop.f32.mrf.mxu3 }
  0xc3   :  { %v166_v34 = vpop.f32.mrf.mxu0  ;;  %v198_v35 = vpop.f32.mrf.mxu1  ;;  %v260_v45 = vadd.f32 %v259_v33, %v227_v32 }
  0xc4   :  { %v199_v37 = vadd.f32 %v198_v35, %v166_v34 }
  0xc5   :  { %v275_v54 = vsub.f32 %v260_v45, %v269_v50 }
  0xc6   :  { %v276_v41 = vsub.f32 %v199_v37, %v270_v30 }
  0xc8   :  { %v294_v43 = vadd.f32 %v276_v41, %v274_v40 }
  0xca   :  { %v296_v47 = vadd.f32 58.5225, %v294_v43  ;;  %v230_v48 = vpop.f32.mrf.mxu2  ;;  %v262_v49 = vpop.f32.mrf.mxu3 }
  0xcb   :  { %v263_v51 = vadd.f32 %v262_v49, %v230_v48  ;;  %v169_v57 = vpop.f32.mrf.mxu0  ;;  %v201_v58 = vpop.f32.mrf.mxu1 }
  0xcc   :  { %v298_v52 = vmul.f32 %v296_v47, %v292_v46  ;;  %v202_v0 = vadd.f32 %v201_v58, %v169_v57 }
  0xcd   :  { %v277_v55 = vsub.f32 %v263_v51, %v271_v44 }
  0xce   :  { %368 = vrcp.f32 %v298_v52  ;;  %v278_v6 = vsub.f32 %v202_v0, %v272_v3  ;;  %v311_v16 = vand.u32 2147483648, %v298_v52  ;;  %vm305_vm1 = vweird.f32 %v298_v52 }
  0xcf   :  { %v295_v56 = vadd.f32 %v277_v55, %v275_v54  ;;  %v309_v18 = vand.u32 2147483647, %v298_v52 }
  0xd0   :  { %v284_v11 = vmul.f32 2.0, %v278_v6  ;;  %v312_v27 = vor.u32 1.1754944e-38, %v311_v16 }
  0xd1   :  { %v297_v60 = vadd.f32 58.5225, %v295_v56  ;;  %vm310_vm4 = vcmp.eq.f32.partialorder %v309_v18, 8.507059e+37 }
  0xd2   :  { %v233_v61 = vpop.f32.mrf.mxu2  ;;  %v265_v62 = vpop.f32.mrf.mxu3  ;;  %v286_v20 = vadd.f32 58.5225, %v284_v11 }
  0xd3   :  { %v299_v63 = vmul.f32 %v297_v60, %v293_v59  ;;  %v266_v2 = vadd.f32 %v265_v62, %v233_v61 }
  0xd4   :  { %v369_v1 = vpop.eup %368  ;;  %v288_v32 = vmul.f32 %v286_v20, %v282_v26 }
  0xd5   :  { %370 = vrcp.f32 %v299_v63  ;;  %v301_v4 = vmul.f32 %v369_v1, %v298_v52  ;;  %v279_v8 = vsub.f32 %v266_v2, %v273_v5  ;;  %vm306_vm0 = vweird.f32 %v369_v1 }
  0xd6   :  { %vm307_vm2 = vmor %vm305_vm1, %vm306_vm0  ;;  %v324_v21 = vand.u32 2147483647, %v299_v63  ;;  %v326_v22 = vand.u32 2147483648, %v299_v63  ;;  %vm320_vm5 = vweird.f32 %v299_v63 }
  0xd7   :  { %v302_v7 = vsub.f32 1.0, %v301_v4  ;;  %v285_v12 = vmul.f32 2.0, %v279_v8 }
  0xd8   :  { %v327_v31 = vor.u32 1.1754944e-38, %v326_v22  ;;  %vm325_vm7 = vcmp.eq.f32.partialorder %v324_v21, 8.507059e+37 }
  0xd9   :  { %v303_v9 = vmul.f32 %v369_v1, %v302_v7  ;;  %v287_v23 = vadd.f32 58.5225, %v285_v12 }
  0xdb   :  { %v371_v10 = vpop.eup %370  ;;  %v304_v13 = vadd.f32 %v369_v1, %v303_v9  ;;  %v289_v33 = vmul.f32 %v287_v23, %v283_v28 }
  0xdc   :  { %v316_v14 = vmul.f32 %v371_v10, %v299_v63  ;;  %vm321_vm3 = vweird.f32 %v371_v10 }
  0xdd   :  { %v308_v24 = vsel %vm307_vm2, %v369_v1, %v304_v13  ;;  %vm322_vm6 = vmor %vm320_vm5, %vm321_vm3 }
  0xde   :  { %v317_v19 = vsub.f32 1.0, %v316_v14  ;;  %v313_v30 = vsel %vm310_vm4, %v312_v27, %v308_v24 }
  0xdf   :  { %v314_v36 = vmul.f32 %v313_v30, %v288_v32 }
  0xe0   :  { %v318_v25 = vmul.f32 %v371_v10, %v317_v19 }
  0xe2   :  { %v319_v29 = vadd.f32 %v371_v10, %v318_v25 }
  0xe4   :  { %v323_v34 = vsel %vm322_vm6, %v371_v10, %v319_v29 }
  0xe5   :  { %v328_v35 = vsel %vm325_vm7, %v327_v31, %v323_v34 }
  0xe6   :  { %v329_v37 = vmul.f32 %v328_v35, %v289_v33 }
  0xe8   :  { %v330_v38 = vadd.f32 %v329_v37, %v314_v36 }
  0xea   :  { %331 = vadd.xlane.f32.xlu0 %v330_v38 }
 0x15d   :  { %v332_v39 = vpop.xlane.xlu0 %331 }
 0x15e   :  { %v333_v40 = vrot.slane %v332_v39, 4 }
 0x160   :  { %v334_v41 = vadd.f32 %v333_v40, %v332_v39 }
 0x162   :  { %v335_v42 = vrot.slane %v334_v41, 2 }
 0x164   :  { %v336_v43 = vadd.f32 %v335_v42, %v334_v41 }
 0x166   :  { %v337_v44 = vrot.slane %v336_v43, 1 }
 0x168   :  { %v338_v45 = vadd.f32 %v337_v44, %v336_v43 }
 0x16a   :  { %360 = vpush %v338_v45 }
 0x19b   :  { %s361_s4 = spop %360 }
 0x19c   :  { %v340_v46 = vstv %s361_s4 }
 0x19d   :  { %341 = vst [vmem:[#allocation8] sm:$0xff] %v340_v46 }
 0x19e   :  { %352 = dma.vmem_to_hbm [thread:$0]  %s348_s2, 128, %s350_s30, [#allocation4]  }
 0x19f   :  { %472 = dma.done.wait [#allocation4], 128  }
 0x1a0   :  { %473 = vsyncadd [#allocation4], 4294967168 }
 0x1a1   :  { %357 = vsyncpa [#allocation3], 1 }
 0x1a2   :  { %358 = vsyncpa [#allocation6], 1 }
 0x1a3   :  { %359 = vsyncpa [#allocation4], 1 }

</bundles_post_ra>
